<compile_context>
chip_gen: v6e
topology: v6e:2x2x1
jax: 0.10.0
libtpu: 0.0.40
codegen_flags: <defaults>
</compile_context>

<pallas_src>
import functools

import jax
import jax.numpy as jnp
from jax.experimental import pallas as pl
from jax.experimental.pallas import tpu as pltpu


def _mask_estimation_kernel(x_ref, wbig_ref, wr_ref, o_ref):
    # Block shapes:
    #   x_ref    : (1, D, TILE_T)        VMEM
    #   wbig_ref : (2*nspk*D, D)         VMEM  (per-speaker prescaled [W_tanh; W_sigmoid])
    #   wr_ref   : (D, D)                VMEM
    #   o_ref    : (1, nspk, D, TILE_T)  VMEM
    D = wr_ref.shape[0]
    nspk = o_ref.shape[1]

    x = x_ref[0]                                                    # (D, TILE_T) f32

    # One fused MXU matmul covering both branches of every speaker.
    y = jnp.dot(wbig_ref[...], x, preferred_element_type=jnp.float32)  # (2*nspk*D, TILE_T)

    # Per-speaker gate + final matmul, stored directly (nspk is small & static).
    for c in range(nspk):
        y_t = y[(2 * c) * D:(2 * c + 1) * D]                        # scale_c*W_tanh    @ x
        y_s = y[(2 * c + 1) * D:(2 * c + 2) * D]                    # scale_c*W_sigmoid @ x
        # sigmoid(z) == 0.5*(tanh(0.5*z) + 1): 2 EUP pushes/elem instead of ~3.
        gate = jnp.tanh(y_t) * (0.5 * (jnp.tanh(0.5 * y_s) + 1.0))  # (D, TILE_T)
        r = jnp.maximum(
            jnp.dot(wr_ref[...], gate, preferred_element_type=jnp.float32), 0.0)
        o_ref[0, c] = r.astype(o_ref.dtype)


@functools.partial(jax.jit, static_argnames=("tile_t",))
def mask_estimation(x, scale, w_tanh, w_sigmoid, w_relu, *, tile_t=None):
    """x: [B, D, T] f32; scale: [nspk] f32; w_*: [D, D] f32 -> [B, nspk, D, T]."""
    B, D, T = x.shape
    nspk = scale.shape[0]

    # Fold the per-speaker Conv2d scalar into the fused 1x1-conv weights:
    # rows [2cD : 2cD+D] = scale_c*W_tanh, rows [2cD+D : 2(c+1)D] = scale_c*W_sigmoid.
    w_pair = jnp.concatenate([w_tanh, w_sigmoid], axis=0)            # (2D, D)
    w_big = (scale[:, None, None] * w_pair[None]).reshape(2 * nspk * D, D)

    # Lane-dense time tile chosen from a VMEM budget (works on v5e/v6e/v7x).
    if tile_t is None:
        vmem_budget = 24 * 1024 * 1024                               # block-data budget
        bytes_per_col = 4 * (2 * (D + nspk * D)                      # dbl-buffered in/out
                             + (2 * nspk * D + D + nspk * D))        # y / gate / r temps
        cap = max(128, (vmem_budget // (bytes_per_col * 128)) * 128)
        cap = min(cap, 8192)
        tile_t = T if T <= cap else cap                              # full-T block is legal
    n_t = pl.cdiv(T, tile_t)                                         # ragged edge OK

    flops = 2 * (2 * nspk * D) * D * B * T + 2 * nspk * D * D * B * T
    bytes_accessed = 4 * (B * D * T + B * nspk * D * T
                          + 2 * nspk * D * D + D * D)
    transcendentals = 2 * B * nspk * D * T

    out = pl.pallas_call(
        _mask_estimation_kernel,
        out_shape=jax.ShapeDtypeStruct((B, nspk, D, T), x.dtype),
        grid_spec=pltpu.PrefetchScalarGridSpec(
            num_scalar_prefetch=0,
            grid=(B, n_t),
            in_specs=[
                # input (D, TILE_T) slab for (batch b, time tile t)
                pl.BlockSpec((1, D, tile_t), lambda b, t: (b, 0, t)),
                # prescaled fused weights and W_relu, resident full-size
                pl.BlockSpec((2 * nspk * D, D), lambda b, t: (0, 0)),
                pl.BlockSpec((D, D), lambda b, t: (0, 0)),
            ],
            out_specs=pl.BlockSpec((1, nspk, D, tile_t),
                                   lambda b, t: (b, 0, 0, t)),
        ),
        compiler_params=pltpu.CompilerParams(
            dimension_semantics=("parallel", "parallel"),
            vmem_limit_bytes=48 * 1024 * 1024),
        cost_estimate=pl.CostEstimate(flops=flops,
                                      transcendentals=transcendentals,
                                      bytes_accessed=bytes_accessed),
    )(x, w_big, w_relu)
    return out
    # TODO(synk): optional bf16 storage of x / output (and bf16 matmul operands with
    # f32 accumulation) halves HBM traffic on v6e/v7x but breaks the f32 tolerance.


def _reference(x, scale, w_tanh, w_sigmoid, w_relu):
    B, D, T = x.shape
    nspk = scale.shape[0]
    est = scale[None, :, None, None] * x[:, None, :, :]              # [B, nspk, D, T]
    est = est.reshape(B * nspk, D, T)
    t = jnp.tanh(jnp.einsum('od,ndt->not', w_tanh, est))
    s = jax.nn.sigmoid(jnp.einsum('od,ndt->not', w_sigmoid, est))
    g = t * s
    r = jnp.maximum(jnp.einsum('od,ndt->not', w_relu, g), 0.0)
    return r.reshape(B, nspk, D, T)


if __name__ == "__main__":
    B, D, T, nspk = 2, 32, 16, 2   # feature_dim=D=32; basic_signal unused in forward

    key = jax.random.PRNGKey(0)
    kx, k0, k1, k2, k3 = jax.random.split(key, 5)

    x = jax.random.normal(kx, (B, D, T), dtype=jnp.float32)
    # Conv2d(1, nspk, k=1, bias=False) weight -> one scalar per output channel.
    scale = jax.random.normal(k0, (nspk,), dtype=jnp.float32) * 0.5
    # Conv1d(D, D, k=1, bias=False) weights -> DxD matrices.
    w_tanh = jax.random.normal(k1, (D, D), dtype=jnp.float32) * (1.0 / D ** 0.5)
    w_sigmoid = jax.random.normal(k2, (D, D), dtype=jnp.float32) * (1.0 / D ** 0.5)
    w_relu = jax.random.normal(k3, (D, D), dtype=jnp.float32) * (1.0 / D ** 0.5)

    out = mask_estimation(x, scale, w_tanh, w_sigmoid, w_relu)
    out = jax.block_until_ready(out)

    ref = _reference(x, scale, w_tanh, w_sigmoid, w_relu)
    assert out.shape == (B, nspk, D, T)
    # 2e-5 tolerance: f32 reassociation (scale folded into weights) + tanh-form sigmoid.
    assert jnp.allclose(out, ref, atol=2e-5, rtol=2e-5), float(
        jnp.max(jnp.abs(out - ref)))

    print("KERNEL_OK")
</pallas_src>

<mosaic_0001>
module attributes {stable_mosaic.version = 11 : i64} {
  func.func @_mask_estimation_kernel(%arg0: i32, %arg1: i32, %arg2: memref<1x32x16xf32, #tpu.memory_space<vmem>>, %arg3: memref<128x32xf32, #tpu.memory_space<vmem>>, %arg4: memref<32x32xf32, #tpu.memory_space<vmem>>, %arg5: memref<1x2x32x16xf32, #tpu.memory_space<vmem>>) attributes {dimension_semantics = [#tpu.dimension_semantics<parallel>, #tpu.dimension_semantics<parallel>], iteration_bounds = array<i64: 2, 1>, scalar_prefetch = 0 : i64, scratch_operands = 0 : i64, tpu.core_type = #tpu.core_type<tc>, window_params = [{transform_indices = @transform_0, window_bounds = array<i64: 1, 32, 16>}, {pipeline_mode = #tpu.pipeline_mode<synchronous>, transform_indices = @transform_1, window_bounds = array<i64: 128, 32>}, {pipeline_mode = #tpu.pipeline_mode<synchronous>, transform_indices = @transform_2, window_bounds = array<i64: 32, 32>}, {transform_indices = @transform_3, window_bounds = array<i64: 1, 2, 32, 16>}]} {
    %c0 = arith.constant 0 : index
    %c0_0 = arith.constant 0 : index
    %c0_1 = arith.constant 0 : index
    %0 = vector.load %arg2[%c0, %c0_0, %c0_1] : memref<1x32x16xf32, #tpu.memory_space<vmem>>, vector<1x32x16xf32>
    %1 = vector.shape_cast %0 : vector<1x32x16xf32> to vector<32x16xf32>
    %c0_2 = arith.constant 0 : index
    %c0_3 = arith.constant 0 : index
    %2 = vector.load %arg3[%c0_2, %c0_3] : memref<128x32xf32, #tpu.memory_space<vmem>>, vector<128x32xf32>
    %cst = arith.constant dense<0.000000e+00> : vector<128x16xf32>
    %3 = tpu.matmul %2, %1, %cst {dimension_numbers = #tpu.dot_dimension_numbers<[1], [0], [0], [1], [0, 0, 1, 1], [], []>} : vector<128x32xf32>, vector<32x16xf32>, vector<128x16xf32> -> vector<128x16xf32>
    %4 = vector.extract_strided_slice %3 {offsets = [0, 0], sizes = [32, 16], strides = [1, 1]} : vector<128x16xf32> to vector<32x16xf32>
    %5 = vector.extract_strided_slice %3 {offsets = [32, 0], sizes = [32, 16], strides = [1, 1]} : vector<128x16xf32> to vector<32x16xf32>
    %6 = math.tanh %4 : vector<32x16xf32>
    %cst_4 = arith.constant 5.000000e-01 : f32
    %7 = vector.broadcast %cst_4 : f32 to vector<32x16xf32>
    %8 = arith.mulf %7, %5 : vector<32x16xf32>
    %9 = math.tanh %8 : vector<32x16xf32>
    %cst_5 = arith.constant 1.000000e+00 : f32
    %10 = vector.broadcast %cst_5 : f32 to vector<32x16xf32>
    %11 = arith.addf %9, %10 : vector<32x16xf32>
    %cst_6 = arith.constant 5.000000e-01 : f32
    %12 = vector.broadcast %cst_6 : f32 to vector<32x16xf32>
    %13 = arith.mulf %12, %11 : vector<32x16xf32>
    %14 = arith.mulf %6, %13 : vector<32x16xf32>
    %c0_7 = arith.constant 0 : index
    %c0_8 = arith.constant 0 : index
    %15 = vector.load %arg4[%c0_7, %c0_8] : memref<32x32xf32, #tpu.memory_space<vmem>>, vector<32x32xf32>
    %cst_9 = arith.constant dense<0.000000e+00> : vector<32x16xf32>
    %16 = tpu.matmul %15, %14, %cst_9 {dimension_numbers = #tpu.dot_dimension_numbers<[1], [0], [0], [1], [0, 0, 1, 1], [], []>} : vector<32x32xf32>, vector<32x16xf32>, vector<32x16xf32> -> vector<32x16xf32>
    %cst_10 = arith.constant 0.000000e+00 : f32
    %17 = vector.broadcast %cst_10 : f32 to vector<32x16xf32>
    %18 = arith.maximumf %16, %17 : vector<32x16xf32>
    %c0_11 = arith.constant 0 : index
    %c0_12 = arith.constant 0 : index
    %c0_13 = arith.constant 0 : index
    %c0_14 = arith.constant 0 : index
    %19 = vector.load %arg5[%c0_11, %c0_12, %c0_13, %c0_14] : memref<1x2x32x16xf32, #tpu.memory_space<vmem>>, vector<1x1x32x16xf32>
    %20 = vector.shape_cast %19 : vector<1x1x32x16xf32> to vector<32x16xf32>
    %21 = vector.shape_cast %18 : vector<32x16xf32> to vector<1x1x32x16xf32>
    tpu.vector_store %arg5[%c0_11, %c0_12, %c0_13, %c0_14], %21 {strides = array<i32>} : memref<1x2x32x16xf32, #tpu.memory_space<vmem>>, vector<1x1x32x16xf32>,
    %22 = vector.extract_strided_slice %3 {offsets = [64, 0], sizes = [32, 16], strides = [1, 1]} : vector<128x16xf32> to vector<32x16xf32>
    %23 = vector.extract_strided_slice %3 {offsets = [96, 0], sizes = [32, 16], strides = [1, 1]} : vector<128x16xf32> to vector<32x16xf32>
    %24 = math.tanh %22 : vector<32x16xf32>
    %cst_15 = arith.constant 5.000000e-01 : f32
    %25 = vector.broadcast %cst_15 : f32 to vector<32x16xf32>
    %26 = arith.mulf %25, %23 : vector<32x16xf32>
    %27 = math.tanh %26 : vector<32x16xf32>
    %cst_16 = arith.constant 1.000000e+00 : f32
    %28 = vector.broadcast %cst_16 : f32 to vector<32x16xf32>
    %29 = arith.addf %27, %28 : vector<32x16xf32>
    %cst_17 = arith.constant 5.000000e-01 : f32
    %30 = vector.broadcast %cst_17 : f32 to vector<32x16xf32>
    %31 = arith.mulf %30, %29 : vector<32x16xf32>
    %32 = arith.mulf %24, %31 : vector<32x16xf32>
    %c0_18 = arith.constant 0 : index
    %c0_19 = arith.constant 0 : index
    %33 = vector.load %arg4[%c0_18, %c0_19] : memref<32x32xf32, #tpu.memory_space<vmem>>, vector<32x32xf32>
    %cst_20 = arith.constant dense<0.000000e+00> : vector<32x16xf32>
    %34 = tpu.matmul %33, %32, %cst_20 {dimension_numbers = #tpu.dot_dimension_numbers<[1], [0], [0], [1], [0, 0, 1, 1], [], []>} : vector<32x32xf32>, vector<32x16xf32>, vector<32x16xf32> -> vector<32x16xf32>
    %cst_21 = arith.constant 0.000000e+00 : f32
    %35 = vector.broadcast %cst_21 : f32 to vector<32x16xf32>
    %36 = arith.maximumf %34, %35 : vector<32x16xf32>
    %c0_22 = arith.constant 0 : index
    %c1 = arith.constant 1 : index
    %c0_23 = arith.constant 0 : index
    %c0_24 = arith.constant 0 : index
    %37 = vector.load %arg5[%c0_22, %c1, %c0_23, %c0_24] : memref<1x2x32x16xf32, #tpu.memory_space<vmem>>, vector<1x1x32x16xf32>
    %38 = vector.shape_cast %37 : vector<1x1x32x16xf32> to vector<32x16xf32>
    %39 = vector.shape_cast %36 : vector<32x16xf32> to vector<1x1x32x16xf32>
    tpu.vector_store %arg5[%c0_22, %c1, %c0_23, %c0_24], %39 {strides = array<i32>} : memref<1x2x32x16xf32, #tpu.memory_space<vmem>>, vector<1x1x32x16xf32>,
    return
  }
  func.func @transform_0(%arg0: i32, %arg1: i32) -> (i32, i32, i32) {
    %c0_i32 = arith.constant 0 : i32
    %c0_i32_0 = arith.constant 0 : i32
    return %arg0, %c0_i32, %arg1 : i32, i32, i32
  }
  func.func @transform_1(%arg0: i32, %arg1: i32) -> (i32, i32) {
    %c0_i32 = arith.constant 0 : i32
    %c0_i32_0 = arith.constant 0 : i32
    %c0_i32_1 = arith.constant 0 : i32
    return %c0_i32, %c0_i32_0 : i32, i32
  }
  func.func @transform_2(%arg0: i32, %arg1: i32) -> (i32, i32) {
    %c0_i32 = arith.constant 0 : i32
    %c0_i32_0 = arith.constant 0 : i32
    %c0_i32_1 = arith.constant 0 : i32
    return %c0_i32, %c0_i32_0 : i32, i32
  }
  func.func @transform_3(%arg0: i32, %arg1: i32) -> (i32, i32, i32, i32) {
    %c0_i32 = arith.constant 0 : i32
    %c0_i32_0 = arith.constant 0 : i32
    %c0_i32_1 = arith.constant 0 : i32
    return %arg0, %c0_i32, %c0_i32_0, %arg1 : i32, i32, i32, i32
  }
}

</mosaic_0001>

<bundles_post_ra>
// kernel: mask_estimation.1
= control target key start
LH: loop header
LB: loop body
LE: loop exit
PB: predicated region body
PF: predicated region fallthrough
CT: control target
= control target key end

     0   :  { %s1012_s12 = smov 0   ;;  %s1014_s13 = smov 0   ;;  %s1145_s0 = inlined_call_operand.vmem [shape: f32[2,32,16], index: 0, kind: input, shape index: {}]   ;;  %s1146_s1 = inlined_call_operand.vmem [shape: f32[128,32], index: 1, kind: input, shape index: {}]   ;;  %s1147_s2 = inlined_call_operand.vmem [shape: f32[32,32], index: 2, kind: input, shape index: {}]   ;;  %s1148_s3 = inlined_call_operand.vmem [shape: f32[2,2,32,16], index: 3, kind: output, shape index: {}]  }
   0x1   :  { %s1016_s14 = smov 0  }
   0x2 LB: > { %s25_s15 = sadd.s32 1, %s986_s13  ;;  %p771_p0 = scmp.ge.s32.totalorder %s990_s14, 1  ;;  %s990_s14 = sphi %s1016_s14, %s13_s14   ;;  %s986_s13 = sphi %s1014_s13, %s1150_s13   ;;  %s982_s12 = sphi %s1012_s12, %s1149_s12  }
   0x3   : > { %p27_p1 = scmp.ge.s32.totalorder %s25_s15, 2  ;;  %p156_p2 = scmp.lt.s32.totalorder %s990_s14, 3 }
   0x5   : > { %s1152_s15 = smov (%p27_p1, %s25_s15), 0  ;;  %p157_p3 = pnand %p771_p0, %p156_p2 }
   0x6   : > { %p186_p4 = scmp.lt.s32.totalorder (!%p157_p3), %s982_s12, 1 }
   0x7   : > { %160 = sbr.rel (%p157_p3) target bundleno = 469 (0x1d5), region = 32 }
   0xc   : > { %v206_v0 = vld [vmem:[%s1146_s1] sm:$0xff]  ;;  %vm222_vm0 = vcmask 261120   ;;  %s1154_s12 = smov (!%p186_p4, %s982_s12), 1  ;;  %v207_v6 = vld [vmem:[%s1146_s1 + $0x8] sm:$0xff]  ;;  %v208_v8 = vld [vmem:[%s1146_s1 + $0x10] sm:$0xff]  ;;  %vm545_vm1 = vcmask 130048  }
   0xd   : > { %852 = vmatprep.mubr.msk.f32.mxu0 %vm222_vm0, %v206_v0  ;;  %v218_v1 = vld [vmem:[%s1146_s1 + $0x60] sm:$0xff]  ;;  %s806_s20 = sshll.u32 %s1154_s12, 5  ;;  %v219_v7 = vld [vmem:[%s1146_s1 + $0x68] sm:$0xff]  ;;  %v220_v9 = vld [vmem:[%s1146_s1 + $0x70] sm:$0xff]  ;;  %s807_s10 = sshll.u32 %s1154_s12, 6 }
   0xe   : > { %870 = vmatprep.mubr.msk.f32.mxu1 %vm222_vm0, %v218_v1  ;;  %s193_s23 = scalar_lea.vmem %s1145_s0, %s806_s20  ;;  %v209_v10 = vld [vmem:[%s1146_s1 + $0x18] sm:$0xff]  ;;  %v210_v12 = vld [vmem:[%s1146_s1 + $0x20] sm:$0xff]  ;;  %v211_v13 = vld [vmem:[%s1146_s1 + $0x28] sm:$0xff]  ;;  %s201_s17 = scalar_lea.vmem %s1148_s3, %s807_s10 }
   0xf   : > { %v205_v2 = vld [vmem:[%s193_s23 + $0x18] sm:$0xff]  ;;  %v204_v3 = vld [vmem:[%s193_s23 + $0x10] sm:$0xff]  ;;  %v203_v4 = vld [vmem:[%s193_s23 + $0x8] sm:$0xff] }
  0x10   : > { %844 = vmatprep.subr.mxu0 %v205_v2  ;;  %904 = vmatprep.subr.mxu1 %v205_v2  ;;  %v202_v5 = vld [vmem:[%s193_s23] sm:$0xff]  ;;  %v221_v11 = vld [vmem:[%s1146_s1 + $0x78] sm:$0xff]  ;;  %v212_v14 = vld [vmem:[%s1146_s1 + $0x30] sm:$0xff] }
  0x11   : > { %845 = vmatpush3.msra.mxu0 %v205_v2  ;;  %908 = vmatpush3.msra.mxu1 %v205_v2  ;;  %v213_v15 = vld [vmem:[%s1146_s1 + $0x38] sm:$0xff]  ;;  %v214_v16 = vld [vmem:[%s1146_s1 + $0x40] sm:$0xff]  ;;  %v215_v17 = vld [vmem:[%s1146_s1 + $0x48] sm:$0xff] }
  0x12   : > { %846 = vmatprep.subr.mxu0 %v204_v3  ;;  %905 = vmatprep.subr.mxu1 %v204_v3  ;;  %v216_v18 = vld [vmem:[%s1146_s1 + $0x50] sm:$0xff]  ;;  %v217_v19 = vld [vmem:[%s1146_s1 + $0x58] sm:$0xff]  ;;  %v1103_v20 = vld [vmem:[%s1147_s2] sm:$0xff] }
  0x13   : > { %847 = vmatpush3.msra.mxu0 %v204_v3  ;;  %909 = vmatpush3.msra.mxu1 %v204_v3 }
  0x14   : > { %848 = vmatprep.subr.mxu0 %v203_v4  ;;  %906 = vmatprep.subr.mxu1 %v203_v4 }
  0x15   : > { %849 = vmatpush3.msra.mxu0 %v203_v4  ;;  %910 = vmatpush3.msra.mxu1 %v203_v4 }
  0x16   : > { %850 = vmatprep.subr.mxu0 %v202_v5  ;;  %907 = vmatprep.subr.mxu1 %v202_v5 }
  0x17   : > { %851 = vmatpush3.msra.mxu0 %v202_v5  ;;  %911 = vmatpush3.msra.mxu1 %v202_v5 }
  0x18   : > { %853 = vmatmul.mubr.msk.f32.vlgmr.msra.gmra.mxu0 %vm222_vm0, %v207_v6  ;;  %871 = vmatmul.mubr.msk.f32.vlgmr.msra.gmra.mxu1 %vm222_vm0, %v219_v7 }
  0x19   : > { %855 = vmatprep.mubr.msk.f32.mxu0 %vm222_vm0, %v208_v8  ;;  %873 = vmatprep.mubr.msk.f32.mxu1 %vm222_vm0, %v220_v9 }
  0x1c   : > { %856 = vmatmul.mubr.msk.f32.gmra.mxu0 %vm222_vm0, %v209_v10  ;;  %874 = vmatmul.mubr.msk.f32.gmra.mxu1 %vm222_vm0, %v221_v11 }
  0x1d   : > { %858 = vmatprep.mubr.msk.f32.mxu0 %vm222_vm0, %v210_v12  ;;  %884 = vmatprep.mubr.msk.f32.mxu1 %vm222_vm0, %v1103_v20 }
  0x20   : > { %859 = vmatmul.mubr.msk.f32.gmra.mxu0 %vm222_vm0, %v211_v13 }
  0x21   : > { %861 = vmatprep.mubr.msk.f32.mxu0 %vm222_vm0, %v212_v14  ;;  %v441_v14 = vld [vmem:[%s1147_s2 + $0x8] sm:$0xff] }
  0x24   : > { %862 = vmatmul.mubr.msk.f32.gmra.mxu0 %vm222_vm0, %v213_v15 }
  0x25   : > { %864 = vmatprep.mubr.msk.f32.mxu0 %vm222_vm0, %v214_v16  ;;  %v442_v16 = vld [vmem:[%s1147_s2 + $0x10] sm:$0xff] }
  0x28   : > { %865 = vmatmul.mubr.msk.f32.gmra.mxu0 %vm222_vm0, %v215_v17 }
  0x29   : > { %867 = vmatprep.mubr.msk.f32.mxu0 %vm222_vm0, %v216_v18 }
  0x2c   : > { %868 = vmatmul.mubr.msk.f32.gmra.mxu0 %vm222_vm0, %v217_v19 }
  0xd8   : > { %v854_v21 = vpop.f32.mrf.mxu0  ;;  %v872_v22 = vpop.f32.mrf.mxu1 }
  0xd9   : > { %v555_v39 = vmul.f32 0.5, %v872_v22  ;;  %v443_v22 = vld [vmem:[%s1147_s2 + $0x18] sm:$0xff] }
  0xda   : > { %v337_v23 = vpop.f32.mrf.mxu0  ;;  %v397_v24 = vpop.f32.mrf.mxu1 }
  0xdb   : > { %v554_v41 = vmul.f32 0.5, %v397_v24 }
  0xdc   : > { %v857_v25 = vpop.f32.mrf.mxu0  ;;  %v875_v27 = vpop.f32.mrf.mxu1 }
  0xdd   : > { %v557_v29 = vmul.f32 0.5, %v875_v27 }
  0xde   : > { %v347_v26 = vpop.f32.mrf.mxu0  ;;  %v407_v34 = vpop.f32.mrf.mxu1 }
  0xdf   : > { %936 = vtanh.f32 %v557_v29  ;;  %v556_v38 = vmul.f32 0.5, %v407_v34 }
  0xe0   : > { %v860_v28 = vpop.f32.mrf.mxu0 }
  0xe1   : > { %v421_v30 = vmul.f32 0.5, %v860_v28 }
  0xe2   : > { %v357_v31 = vpop.f32.mrf.mxu0 }
  0xe3   : > { %v420_v32 = vmul.f32 0.5, %v357_v31  ;;  %938 = vtanh.f32 %v421_v30 }
  0xe4   : > { %v863_v33 = vpop.f32.mrf.mxu0 }
  0xe5   : > { %v423_v35 = vmul.f32 0.5, %v863_v33  ;;  %940 = vtanh.f32 %v420_v32 }
  0xe6   : > { %v367_v36 = vpop.f32.mrf.mxu0 }
  0xe7   : > { %942 = vtanh.f32 %v423_v35  ;;  %v422_v37 = vmul.f32 0.5, %v367_v36 }
  0xe8   : > { %944 = vtanh.f32 %v854_v21  ;;  %v866_v40 = vpop.f32.mrf.mxu0 }
  0xe9   : > { %946 = vtanh.f32 %v422_v37 }
  0xea   : > { %948 = vtanh.f32 %v857_v25  ;;  %v377_v42 = vpop.f32.mrf.mxu0 }
  0xeb   : > { %950 = vtanh.f32 %v556_v38 }
  0xec   : > { %952 = vtanh.f32 %v555_v39  ;;  %v869_v43 = vpop.f32.mrf.mxu0  ;;  %v937_v45 = vpop.eup %936 }
  0xed   : > { %954 = vtanh.f32 %v347_v26  ;;  %v565_v57 = vadd.f32 1.0, %v937_v45 }
  0xee   : > { %956 = vtanh.f32 %v554_v41  ;;  %v387_v44 = vpop.f32.mrf.mxu0 }
  0xef   : > { %958 = vtanh.f32 %v869_v43  ;;  %v569_v2 = vmul.f32 0.5, %v565_v57 }
  0xf0   : > { %960 = vtanh.f32 %v337_v23  ;;  %v939_v46 = vpop.eup %938 }
  0xf1   : > { %962 = vtanh.f32 %v387_v44  ;;  %v429_v50 = vadd.f32 1.0, %v939_v46 }
  0xf2   : > { %v941_v47 = vpop.eup %940  ;;  %964 = vtanh.f32 %v866_v40 }
  0xf3   : > { %966 = vtanh.f32 %v377_v42  ;;  %v428_v54 = vadd.f32 1.0, %v941_v47  ;;  %v433_v60 = vmul.f32 0.5, %v429_v50 }
  0xf4   : > { %v943_v48 = vpop.eup %942 }
  0xf5   : > { %v945_v49 = vpop.eup %944  ;;  %v431_v51 = vadd.f32 1.0, %v943_v48  ;;  %v432_v1 = vmul.f32 0.5, %v428_v54 }
  0xf6   : > { %v947_v52 = vpop.eup %946  ;;  %v437_v7 = vmul.f32 %v945_v49, %v433_v60 }
  0xf7   : > { %v949_v53 = vpop.eup %948  ;;  %v435_v55 = vmul.f32 0.5, %v431_v51  ;;  %v430_v56 = vadd.f32 1.0, %v947_v52 }
  0xf8   : > { %v951_v58 = vpop.eup %950 }
  0xf9   : > { %v953_v59 = vpop.eup %952  ;;  %v434_v61 = vmul.f32 0.5, %v430_v56  ;;  %v439_v62 = vmul.f32 %v949_v53, %v435_v55  ;;  %v564_v3 = vadd.f32 1.0, %v951_v58 }
  0xfa   : > { %v955_v63 = vpop.eup %954  ;;  %v563_v6 = vadd.f32 1.0, %v953_v59 }
  0xfb   : > { %v957_v0 = vpop.eup %956  ;;  %876 = vmatprep.subr.mxu1 %v439_v62  ;;  %v438_v4 = vmul.f32 %v955_v63, %v434_v61  ;;  %v568_v10 = vmul.f32 0.5, %v564_v3 }
  0xfc   : > { %v959_v5 = vpop.eup %958  ;;  %877 = vmatpush3.msra.mxu1 %v439_v62  ;;  %v562_v9 = vadd.f32 1.0, %v957_v0  ;;  %v567_v15 = vmul.f32 0.5, %v563_v6 }
  0xfd   : > { %878 = vmatprep.subr.mxu1 %v438_v4  ;;  %v961_v8 = vpop.eup %960  ;;  %v573_v12 = vmul.f32 %v959_v5, %v569_v2 }
  0xfe   : > { %879 = vmatpush3.msra.mxu1 %v438_v4  ;;  %v436_v11 = vmul.f32 %v961_v8, %v432_v1  ;;  %v963_v13 = vpop.eup %962  ;;  %v566_v19 = vmul.f32 0.5, %v562_v9 }
  0xff   : > { %880 = vmatprep.subr.mxu1 %v437_v7  ;;  %v965_v17 = vpop.eup %964  ;;  %v572_v21 = vmul.f32 %v963_v13, %v568_v10 }
 0x100   : > { %881 = vmatpush3.msra.mxu1 %v437_v7  ;;  %v967_v18 = vpop.eup %966  ;;  %v571_v23 = vmul.f32 %v965_v17, %v567_v15 }
 0x101   : > { %882 = vmatprep.subr.mxu1 %v436_v11  ;;  %v570_v24 = vmul.f32 %v967_v18, %v566_v19 }
 0x102   : > { %883 = vmatpush3.msra.mxu1 %v436_v11 }
 0x103   : > { %885 = vmatmul.mubr.msk.f32.vlgmr.msra.gmra.mxu1 %vm222_vm0, %v441_v14  ;;  %890 = vmatprep.subr.mxu1 %v573_v12 }
 0x104   : > { %891 = vmatpush3.msra.mxu1 %v573_v12  ;;  %887 = vmatprep.mubr.msk.f32.mxu1 %vm222_vm0, %v442_v16 }
 0x105   : > { %892 = vmatprep.subr.mxu1 %v572_v21 }
 0x106   : > { %893 = vmatpush3.msra.mxu1 %v572_v21 }
 0x107   : > { %888 = vmatmul.mubr.msk.f32.gmra.mxu1 %vm222_vm0, %v443_v22  ;;  %894 = vmatprep.subr.mxu1 %v571_v23 }
 0x108   : > { %895 = vmatpush3.msra.mxu1 %v571_v23  ;;  %898 = vmatprep.mubr.msk.f32.mxu1 %vm222_vm0, %v1103_v20 }
 0x109   : > { %896 = vmatprep.subr.mxu1 %v570_v24 }
 0x10a   : > { %897 = vmatpush3.msra.mxu1 %v570_v24 }
 0x10b   : > { %899 = vmatmul.mubr.msk.f32.vlgmr.msra.gmra.mxu1 %vm222_vm0, %v441_v14 }
 0x10c   : > { %901 = vmatprep.mubr.msk.f32.mxu1 %vm222_vm0, %v442_v16 }
 0x10f   : > { %902 = vmatmul.mubr.msk.f32.gmra.mxu1 %vm222_vm0, %v443_v22 }
 0x1c3   : > { %v886_v25 = vpop.f32.mrf.mxu1 }
 0x1c4   : > { %v542_v26 = vmax.f32 %v886_v25, 0.0 }
 0x1c5   : > { %v522_v27 = vpop.f32.mrf.mxu1 }
 0x1c6   : > { %547 = vst.msk [vmem:[%s201_s17 + $0x8] sm:$0xff] %vm545_vm1, %v542_v26  ;;  %v541_v20 = vmax.f32 %v522_v27, 0.0 }
 0x1c7   : > { %v889_v28 = vpop.f32.mrf.mxu1 }
 0x1c8   : > { %546 = vst.msk [vmem:[%s201_s17] sm:$0xff] %vm545_vm1, %v541_v20  ;;  %v544_v29 = vmax.f32 %v889_v28, 0.0 }
 0x1c9   : > { %v532_v30 = vpop.f32.mrf.mxu1 }
 0x1ca   : > { %549 = vst.msk [vmem:[%s201_s17 + $0x18] sm:$0xff] %vm545_vm1, %v544_v29  ;;  %v543_v31 = vmax.f32 %v532_v30, 0.0 }
 0x1cb   : > { %v900_v32 = vpop.f32.mrf.mxu1 }
 0x1cc   : > { %548 = vst.msk [vmem:[%s201_s17 + $0x10] sm:$0xff] %vm545_vm1, %v543_v31  ;;  %v676_v33 = vmax.f32 %v900_v32, 0.0 }
 0x1cd   : > { %v656_v34 = vpop.f32.mrf.mxu1 }
 0x1ce   : > { %801 = vst.msk [vmem:[%s201_s17 + $0x28] sm:$0xff] %vm545_vm1, %v676_v33  ;;  %v675_v35 = vmax.f32 %v656_v34, 0.0 }
 0x1cf   : > { %v903_v36 = vpop.f32.mrf.mxu1 }
 0x1d0   : > { %800 = vst.msk [vmem:[%s201_s17 + $0x20] sm:$0xff] %vm545_vm1, %v675_v35  ;;  %v678_v37 = vmax.f32 %v903_v36, 0.0 }
 0x1d1   : > { %v666_v38 = vpop.f32.mrf.mxu1 }
 0x1d2   : > { %803 = vst.msk [vmem:[%s201_s17 + $0x38] sm:$0xff] %vm545_vm1, %v678_v37  ;;  %v677_v39 = vmax.f32 %v666_v38, 0.0 }
 0x1d4   : > { %802 = vst.msk [vmem:[%s201_s17 + $0x30] sm:$0xff] %vm545_vm1, %v677_v39 }
 0x1d5 PF: > { %s13_s14 = sadd.s32 1, %s990_s14   ;;  %s1149_s12 = smov %s986_s13 }
 0x1d6   : > { %p10_p5 = scmp.ge.s32.totalorder %s13_s14, 4   ;;  %s1150_s13 = smov %s1152_s15 }
 0x1d8   :  { %12 = sbr.rel (!%p10_p5) target bundleno = 2 (0x2), region = 63 }

</bundles_post_ra>
